<compile_context>
chip_gen: v7x
topology: tpu7x:2x2x1
jax: 0.10.0
libtpu: 0.0.40
codegen_flags: <defaults>
</compile_context>

<pallas_src>
import numpy as np
import jax
import jax.numpy as jnp
from jax.experimental import pallas as pl
from jax.experimental.pallas import tpu as pltpu


# ----------------------------------------------------------------------------
# Causal depthwise conv on a (L, H) tile via shift-and-accumulate.
#   y[l, h] = sum_{d <= l} kt[d, h] * u[l - d, h]
# pltpu.roll runs on the XLU slot; the FMAs are VPU work; masking is a cheap
# iota compare hoisted once.  O(L*H) memory, no Toeplitz tensor.
# ----------------------------------------------------------------------------
def _causal_conv_tile(u, kt, L, H):
    row = jax.lax.broadcasted_iota(jnp.int32, (L, H), 0)   # hoisted once
    acc = u * kt[0:1, :]                                   # tap d = 0
    for d in range(1, L):                                  # static unroll
        shifted = pltpu.roll(u, shift=d, axis=0)           # shifted[l] = u[(l-d) % L]
        shifted = jnp.where(row >= d, shifted, 0.0)        # causal: zero the wrap
        acc = acc + kt[d:d + 1, :] * shifted
    return acc


# ----------------------------------------------------------------------------
# Fused SSDLayer kernel: conv (+ optional dense decoder on the MXU) (+ skip).
# ----------------------------------------------------------------------------
def _make_ssd_layer_kernel(L, H, has_dense, skip):
    if has_dense:
        def kernel(kt_ref, w_ref, b_ref, u_ref, o_ref):
            u = u_ref[0]                                   # (L, H) f32
            y = _causal_conv_tile(u, kt_ref[...], L, H)    # f32 conv
            y = jnp.dot(y.astype(jnp.bfloat16), w_ref[...],
                        preferred_element_type=jnp.float32) + b_ref[...]
            if skip:
                y = y + u
            o_ref[0] = y
    else:
        def kernel(kt_ref, u_ref, o_ref):
            u = u_ref[0]
            y = _causal_conv_tile(u, kt_ref[...], L, H)
            if skip:
                y = y + u
            o_ref[0] = y
    return kernel


def ssd_layer(u, kT, W=None, b=None, skip=False):
    """Fused SSDLayer.  u: (B, L, H) f32; kT: (L, H) f32 causal filter (per channel);
    W: (H, D) bf16 decoder weight or None (identity decoder); b: (1, D) f32."""
    B, L, H = u.shape
    has_dense = W is not None
    D = W.shape[1] if has_dense else H
    kernel = _make_ssd_layer_kernel(L, H, has_dense, skip)

    in_arrays = [kT]
    in_specs = [pl.BlockSpec((L, H), lambda bb: (0, 0))]           # resident
    if has_dense:
        in_arrays += [W, b]
        in_specs += [pl.BlockSpec((H, D), lambda bb: (0, 0)),      # resident
                     pl.BlockSpec((1, D), lambda bb: (0, 0))]      # resident
    in_arrays.append(u)
    in_specs.append(pl.BlockSpec((1, L, H), lambda bb: (bb, 0, 0)))

    return pl.pallas_call(
        kernel,
        out_shape=jax.ShapeDtypeStruct((B, L, D), jnp.float32),
        grid=(B,),
        in_specs=in_specs,
        out_specs=pl.BlockSpec((1, L, D), lambda bb: (bb, 0, 0)),
        compiler_params=pltpu.CompilerParams(
            dimension_semantics=("parallel",)),        # v7x: shard batch over 2 TCs
    )(*in_arrays)


# ----------------------------------------------------------------------------
# Tiled dense kernel (input encoder / input decoder): y = x @ W + b.
# Rows are tiled over a parallel grid; W and b stay resident; bf16 MXU inputs.
# ----------------------------------------------------------------------------
def _dense_kernel(x_ref, w_ref, b_ref, o_ref):
    x = x_ref[...].astype(jnp.bfloat16)
    o_ref[...] = (jnp.dot(x, w_ref[...], preferred_element_type=jnp.float32)
                  + b_ref[...])


def dense(x, W, b, *, tm=256):
    """x: (B, L, H) f32; W: (H, D) bf16; b: (1, D) f32 -> (B, L, D) f32."""
    B, L, H = x.shape
    D = W.shape[1]
    BL = B * L
    tm = min(tm, BL)                       # row tile (multiple of 8 for real sizes)
    x2 = x.reshape(BL, H)
    y2 = pl.pallas_call(
        _dense_kernel,
        out_shape=jax.ShapeDtypeStruct((BL, D), jnp.float32),
        grid=(pl.cdiv(BL, tm),),
        in_specs=[pl.BlockSpec((tm, H), lambda i: (i, 0)),
                  pl.BlockSpec((H, D), lambda i: (0, 0)),
                  pl.BlockSpec((1, D), lambda i: (0, 0))],
        out_specs=pl.BlockSpec((tm, D), lambda i: (i, 0)),
        compiler_params=pltpu.CompilerParams(
            dimension_semantics=("parallel",)),
    )(x2, W, b)
    return y2.reshape(B, L, D)


# ----------------------------------------------------------------------------
# Parameters.  Stored already in kernel layout / dtype (no per-call rebuild):
#   * conv filters as (L, H) f32 (pre-transposed)
#   * dense weights as bf16, biases as (1, D) f32
# Config mirrors: input_encoder = dense H_in->H; encoder/decoder = SSDLayer
# (shift kernel, dense decoder, skip); rollout = SSDLayer(companion kernel,
# identity decoder, no skip); input_decoder = dense H->D_out.
# ----------------------------------------------------------------------------
def init_params(key, H_in, H, D_out, L):
    keys = jax.random.split(key, 8)
    s = 0.1

    def w(k, shape):
        return (jax.random.normal(k, shape, jnp.float32) * s).astype(jnp.bfloat16)

    def filt(k):  # generated as (H, L), stored transposed (L, H) f32
        return (jax.random.normal(k, (H, L), jnp.float32) / L).T

    p = {}
    p["W_in"], p["b_in"] = w(keys[0], (H_in, H)), jnp.zeros((1, H), jnp.float32)
    p["kT_enc"] = filt(keys[1])
    p["W_enc"], p["b_enc"] = w(keys[2], (H, H)), jnp.zeros((1, H), jnp.float32)
    p["kT_roll"] = filt(keys[3])
    p["kT_dec"] = filt(keys[4])
    p["W_dec"], p["b_dec"] = w(keys[5], (H, H)), jnp.zeros((1, H), jnp.float32)
    p["W_out"], p["b_out"] = w(keys[6], (H, D_out)), jnp.zeros((1, D_out), jnp.float32)
    return p


# ----------------------------------------------------------------------------
# SSD.forward
# ----------------------------------------------------------------------------
def ssd_forward(params, u, inference_only=False):
    # z = encoder(input_encoder(u))
    x = dense(u, params["W_in"], params["b_in"])
    z = ssd_layer(x, params["kT_enc"], params["W_enc"], params["b_enc"], skip=True)

    # z_rollout = rollout(z)   (companion kernel, identity decoder, no skip)
    # TODO(synk): closed-loop autoregressive rollout feedback is not modelled;
    # the rollout layer is applied open-loop as a causal long convolution.
    z_rollout = ssd_layer(z, params["kT_roll"], skip=False)
    z_rollout = jnp.concatenate([z[:, :1, :], z_rollout[:, :-1, :]], axis=1)

    # y_rollout = input_decoder(decoder(z_rollout)) ; same branch for y
    def dec_branch(t):
        t = ssd_layer(t, params["kT_dec"], params["W_dec"], params["b_dec"], skip=True)
        return dense(t, params["W_out"], params["b_out"])

    y_rollout = dec_branch(z_rollout)
    y = None if inference_only else dec_branch(z)
    return y_rollout, y, z_rollout, z


# ----------------------------------------------------------------------------
# Pure-JAX reference (f32 activations) for a correctness check.
# ----------------------------------------------------------------------------
def _conv_ref(u, kT):
    L = u.shape[1]
    idx = jnp.arange(L)
    diff = idx[:, None] - idx[None, :]
    k2 = jnp.where((diff >= 0)[..., None], kT[jnp.clip(diff, 0, L - 1)], 0.0)
    return jnp.einsum("lmh,bmh->blh", k2, u)


def _dense_ref(x, W, b):
    return (jnp.einsum("blh,hd->bld", x, W.astype(jnp.float32))
            + b.reshape(1, 1, -1).astype(jnp.float32))


def _layer_ref(u, kT, W=None, b=None, skip=False):
    y = _conv_ref(u, kT)
    if W is not None:
        y = _dense_ref(y, W, b)
    if skip:
        y = y + u
    return y


def ssd_forward_ref(params, u, inference_only=False):
    x = _dense_ref(u, params["W_in"], params["b_in"])
    z = _layer_ref(x, params["kT_enc"], params["W_enc"], params["b_enc"], skip=True)
    z_rollout = _layer_ref(z, params["kT_roll"], skip=False)
    z_rollout = jnp.concatenate([z[:, :1, :], z_rollout[:, :-1, :]], axis=1)

    def dec_branch(t):
        t = _layer_ref(t, params["kT_dec"], params["W_dec"], params["b_dec"], skip=True)
        return _dense_ref(t, params["W_out"], params["b_out"])

    y_rollout = dec_branch(z_rollout)
    y = None if inference_only else dec_branch(z)
    return y_rollout, y, z_rollout, z


if __name__ == "__main__":
    B, L, H_in, H, D_out = 2, 16, 32, 32, 32
    key = jax.random.PRNGKey(0)
    pkey, xkey = jax.random.split(key)
    params = init_params(pkey, H_in, H, D_out, L)
    u = jax.random.normal(xkey, (B, L, H_in), dtype=jnp.float32)

    y_rollout, y, z_rollout, z = ssd_forward(params, u, inference_only=False)
    jax.block_until_ready((y_rollout, y, z_rollout, z))

    assert y_rollout.shape == (B, L, D_out)
    assert y.shape == (B, L, D_out)
    assert z_rollout.shape == (B, L, H)
    assert z.shape == (B, L, H)

    # Numerical check vs. pure-JAX reference (loose tol: kernels use bf16 MXU inputs).
    ry_rollout, ry, rz_rollout, rz = ssd_forward_ref(params, u, inference_only=False)
    for got, want in ((z, rz), (z_rollout, rz_rollout), (y, ry), (y_rollout, ry_rollout)):
        np.testing.assert_allclose(np.asarray(got), np.asarray(want),
                                   rtol=5e-2, atol=5e-2)

    print("KERNEL_OK")
</pallas_src>

<mosaic_0001>
module attributes {stable_mosaic.version = 11 : i64} {
  func.func @_dense_kernel(%arg0: i32, %arg1: memref<32x32xf32, #tpu.memory_space<vmem>>, %arg2: memref<32x32xbf16, #tpu.memory_space<vmem>>, %arg3: memref<1x32xf32, #tpu.memory_space<vmem>>, %arg4: memref<32x32xf32, #tpu.memory_space<vmem>>) attributes {dimension_semantics = [#tpu.dimension_semantics<parallel>], iteration_bounds = array<i64: 1>, scalar_prefetch = 0 : i64, scratch_operands = 0 : i64, tpu.core_type = #tpu.core_type<tc>, window_params = [{transform_indices = @transform_0, window_bounds = array<i64: 32, 32>}, {pipeline_mode = #tpu.pipeline_mode<synchronous>, transform_indices = @transform_1, window_bounds = array<i64: 32, 32>}, {pipeline_mode = #tpu.pipeline_mode<synchronous>, transform_indices = @transform_2, window_bounds = array<i64: 1, 32>}, {transform_indices = @transform_3, window_bounds = array<i64: 32, 32>}]} {
    %c0 = arith.constant 0 : index
    %c0_0 = arith.constant 0 : index
    %0 = vector.load %arg1[%c0, %c0_0] : memref<32x32xf32, #tpu.memory_space<vmem>>, vector<32x32xf32>
    %1 = arith.truncf %0 : vector<32x32xf32> to vector<32x32xbf16>
    %c0_1 = arith.constant 0 : index
    %c0_2 = arith.constant 0 : index
    %2 = vector.load %arg2[%c0_1, %c0_2] : memref<32x32xbf16, #tpu.memory_space<vmem>>, vector<32x32xbf16>
    %cst = arith.constant dense<0.000000e+00> : vector<32x32xf32>
    %3 = tpu.matmul %1, %2, %cst {dimension_numbers = #tpu.dot_dimension_numbers<[1], [0], [0], [1], [0, 0, 1, 1], [], []>} : vector<32x32xbf16>, vector<32x32xbf16>, vector<32x32xf32> -> vector<32x32xf32>
    %c0_3 = arith.constant 0 : index
    %c0_4 = arith.constant 0 : index
    %4 = vector.load %arg3[%c0_3, %c0_4] : memref<1x32xf32, #tpu.memory_space<vmem>>, vector<1x32xf32>
    %5 = vector.broadcast %4 : vector<1x32xf32> to vector<32x32xf32>
    %6 = arith.addf %3, %5 : vector<32x32xf32>
    %c0_5 = arith.constant 0 : index
    %c0_6 = arith.constant 0 : index
    %7 = vector.load %arg4[%c0_5, %c0_6] : memref<32x32xf32, #tpu.memory_space<vmem>>, vector<32x32xf32>
    tpu.vector_store %arg4[%c0_5, %c0_6], %6 {strides = array<i32>} : memref<32x32xf32, #tpu.memory_space<vmem>>, vector<32x32xf32>,
    return
  }
  func.func @transform_0(%arg0: i32) -> (i32, i32) {
    %c0_i32 = arith.constant 0 : i32
    %c0_i32_0 = arith.constant 0 : i32
    return %arg0, %c0_i32 : i32, i32
  }
  func.func @transform_1(%arg0: i32) -> (i32, i32) {
    %c0_i32 = arith.constant 0 : i32
    %c0_i32_0 = arith.constant 0 : i32
    %c0_i32_1 = arith.constant 0 : i32
    return %c0_i32, %c0_i32_0 : i32, i32
  }
  func.func @transform_2(%arg0: i32) -> (i32, i32) {
    %c0_i32 = arith.constant 0 : i32
    %c0_i32_0 = arith.constant 0 : i32
    %c0_i32_1 = arith.constant 0 : i32
    return %c0_i32, %c0_i32_0 : i32, i32
  }
  func.func @transform_3(%arg0: i32) -> (i32, i32) {
    %c0_i32 = arith.constant 0 : i32
    %c0_i32_0 = arith.constant 0 : i32
    return %arg0, %c0_i32 : i32, i32
  }
}

</mosaic_0001>

<bundles_post_ra>
// kernel: tpu_custom_call.1
= control target key start
LH: loop header
LB: loop body
LE: loop exit
PB: predicated region body
PF: predicated region fallthrough
CT: control target
= control target key end

     0   :  { %8 = vsyncpa [#allocation3], 0  ;;  %s327_s0 = inlined_call_operand.hbm [shape: f32[32,32], index: 0, kind: input, shape index: {}]   ;;  %s328_s1 = inlined_call_operand.hbm [shape: bf16[32,32], index: 1, kind: input, shape index: {}]   ;;  %s329_s2 = inlined_call_operand.vmem [shape: f32[1,32], index: 2, kind: input, shape index: {}]   ;;  %s330_s3 = inlined_call_operand.hbm [shape: f32[32,32], index: 3, kind: output, shape index: {}]  }
   0x1   :  { %9 = vsyncpa [#allocation6], 0 }
   0x2   :  { %10 = vsyncpa [#allocation4], 0  ;;  %s249_s12 = smov [#allocation2]   ;;  %s177_s16 = scalar_lea.hbm %s327_s0, 512 }
   0x3   :  { %s16_s13 = sshll.u32 %s249_s12, 4  ;;  %p178_p0 = scmp.ne.s32.totalorder %s327_s0, %s177_s16  ;;  %s17_s13 = int_to_ptr.vmem [resolvable:$true] %s16_s13 }
   0x4   :  { %p181_p1 = scmp.lt.u32.totalorder %s177_s16, %s327_s0 }
   0x6   :  { %p183_p2 = pnand %p181_p1, %p178_p0 }
   0x8   :  { %186 = shalt.err (!%p183_p2)
}
   0x9   :  { %s187_s21 = scalar_lea.vmem %s17_s13, 512  ;;  %p192_p4 = scmp.lt.s32.totalorder %s17_s13, %s17_s13 }
   0xa   :  { %p188_p3 = scmp.ne.s32.totalorder %s17_s13, %s187_s21  ;;  %p193_p5 = scmp.lt.s32.totalorder %s187_s21, %s187_s21 }
   0xc   :  { %p194_p6 = por %p193_p5, %p192_p4 }
   0xe   :  { %p195_p7 = pnand %p194_p6, %p188_p3 }
  0x10   :  { %198 = shalt.err (!%p195_p7)
}
  0x11   :  { %s250_s22 = smov 128   ;;  %s251_s23 = smov 8  }
  0x12   :  { %22 = dma.hbm_to_vmem [thread:$0]  %s327_s0, 512, %s17_s13, [#allocation3], %s250_s22, %s250_s22, %s251_s23  }
  0x13   :  { %s252_s26 = smov [#allocation5]   ;;  %s199_s30 = scalar_lea.hbm %s328_s1, 256 }
  0x14   :  { %s28_s27 = sshll.u32 %s252_s26, 4  ;;  %p200_p8 = scmp.ne.s32.totalorder %s328_s1, %s199_s30  ;;  %s29_s27 = int_to_ptr.vmem [resolvable:$true] %s28_s27 }
  0x15   :  { %p203_p9 = scmp.lt.u32.totalorder %s199_s30, %s328_s1 }
  0x17   :  { %p205_p10 = pnand %p203_p9, %p200_p8 }
  0x19   :  { %208 = shalt.err (!%p205_p10)
}
  0x1a   :  { %s209_s8 = scalar_lea.vmem %s29_s27, 256  ;;  %p214_p12 = scmp.lt.s32.totalorder %s29_s27, %s29_s27 }
  0x1b   :  { %p210_p11 = scmp.ne.s32.totalorder %s29_s27, %s209_s8  ;;  %p215_p13 = scmp.lt.s32.totalorder %s209_s8, %s209_s8 }
  0x1d   :  { %p216_p0 = por %p215_p13, %p214_p12 }
  0x1f   :  { %p217_p1 = pnand %p216_p0, %p210_p11 }
  0x21   :  { %220 = shalt.err (!%p217_p1)
}
  0x22   :  { %s253_s0 = smov 64   ;;  %s254_s9 = smov 4  }
  0x23   :  { %34 = dma.hbm_to_vmem [thread:$0]  %s328_s1, 256, %s29_s27, [#allocation6], %s253_s0, %s253_s0, %s254_s9  }
  0x24   :  { %243 = dma.done.wait [#allocation3], 512  }
  0x25   :  { %244 = vsyncadd [#allocation3], 4294966784 }
  0x26   :  { %245 = dma.done.wait [#allocation6], 256  }
  0x27   :  { %246 = vsyncadd [#allocation6], 4294967040  ;;  %v175_v0 = vld [vmem:[#allocation5] sm:$0xff]   ;;  %v176_v1 = vld [vmem:[#allocation5 + $0x8] sm:$0xff]   ;;  %vm73_vm0 = vcmask 261120   ;;  %s255_s13 = smov [#allocation7]  }
  0x28   :  { %160 = vmatprep.subr.bf16.mxu0 %v175_v0  ;;  %v44_v2 = vld [vmem:[#allocation2] sm:$0xff]  ;;  %v45_v3 = vld [vmem:[#allocation2 + $0x8] sm:$0xff]  ;;  %v46_v5 = vld [vmem:[#allocation2 + $0x10] sm:$0xff]  ;;  %s138_s14 = sshll.u32 %s255_s13, 4  ;;  %s139_s14 = int_to_ptr.vmem [resolvable:$true] %s138_s14 }
  0x29   :  { %161 = vmatpush3.bf16.msra.mxu0 %v175_v0  ;;  %v48_v4 = vpack.c.bf16 %v45_v3, %v44_v2  ;;  %v47_v6 = vld [vmem:[#allocation2 + $0x18] sm:$0xff]  ;;  %v151_v8 = vld [vmem:[%s329_s2] ss:$0 sm:$0xff]  ;;  %s221_s2 = scalar_lea.vmem %s139_s14, 512  ;;  %p226_p3 = scmp.lt.s32.totalorder %s139_s14, %s139_s14 }
  0x2a   :  { %162 = vmatprep.subr.bf16.mxu0 %v176_v1  ;;  %v49_v7 = vpack.c.bf16 %v47_v6, %v46_v5  ;;  %p222_p2 = scmp.ne.s32.totalorder %s139_s14, %s221_s2  ;;  %p227_p4 = scmp.lt.s32.totalorder %s221_s2, %s221_s2 }
  0x2b   :  { %164 = vmatprep.mubr.msk.bf16.mxu0 %vm73_vm0, %v48_v4 }
  0x2c   :  { %p228_p5 = por %p227_p4, %p226_p3 }
  0x2d   :  { %163 = vmatpush3.bf16.msra.mxu0 %v176_v1 }
  0x2e   :  { %p229_p6 = pnand %p228_p5, %p222_p2 }
  0x30   :  { %165 = vmatmul.mubr.msk.bf16.vlgmr.msra.gmra.mrb[0].mxu0 %vm73_vm0, %v49_v7 }
 0x103   :  { %v166_v9 = vpop.f32.mrb[0].mxu0 }
 0x104   :  { %v123_v10 = vadd.f32 %v166_v9, %v151_v8  ;;  %v114_v11 = vpop.f32.mrb[1].mxu0 }
 0x105   :  { %v115_v12 = vadd.f32 %v151_v8, %v114_v11  ;;  %v167_v13 = vpop.f32.mrb[2].mxu0 }
 0x106   :  { %131 = vst.msk [vmem:[#allocation7 + $0x10] sm:$0xff] %vm73_vm0, %v123_v10  ;;  %v126_v14 = vadd.f32 %v167_v13, %v151_v8  ;;  %v117_v15 = vpop.f32.mrb[3].mxu0 }
 0x107   :  { %129 = vst.msk [vmem:[#allocation7] sm:$0xff] %vm73_vm0, %v115_v12  ;;  %v118_v16 = vadd.f32 %v151_v8, %v117_v15 }
 0x108   :  { %132 = vst.msk [vmem:[#allocation7 + $0x18] sm:$0xff] %vm73_vm0, %v126_v14 }
 0x109   :  { %130 = vst.msk [vmem:[#allocation7 + $0x8] sm:$0xff] %vm73_vm0, %v118_v16 }
 0x10a   :  { %232 = shalt.err (!%p229_p6)
}
 0x10b   :  { %s233_s17 = scalar_lea.hbm %s330_s3, 512 }
 0x10c   :  { %p234_p7 = scmp.ne.s32.totalorder %s330_s3, %s233_s17  ;;  %p237_p8 = scmp.lt.u32.totalorder %s233_s17, %s330_s3 }
 0x10e   :  { %p239_p9 = pnand %p237_p8, %p234_p7 }
 0x110   :  { %242 = shalt.err (!%p239_p9)
}
 0x111   :  { %144 = dma.vmem_to_hbm [thread:$0]  %s139_s14, 512, %s330_s3, [#allocation4], %s250_s22, %s250_s22, %s251_s23  }
 0x112   :  { %247 = dma.done.wait [#allocation4], 512  }
 0x113   :  { %248 = vsyncadd [#allocation4], 4294966784 }
 0x114   :  { %148 = vsyncpa [#allocation3], 1 }
 0x115   :  { %149 = vsyncpa [#allocation6], 1 }
 0x116   :  { %150 = vsyncpa [#allocation4], 1 }

</bundles_post_ra>
